<compile_context>
chip_gen: v7x
topology: tpu7x:2x2x1
jax: 0.10.0
libtpu: 0.0.40
codegen_flags: <defaults>
</compile_context>

<pallas_src>
import jax
import jax.numpy as jnp
from jax.experimental import pallas as pl
from jax.experimental.pallas import tpu as pltpu


def _pdqp2_kernel(scal_ref,                              # SMEM (bs*5,) f32
                  x_ref, xbar_ref, y_ref, q_ref, a_ref,
                  clu_ref, b_ref, wkx_ref, ws_ref,
                  xnew_ref, xbarnew_ref, ynew_ref):
    b_blk = x_ref.shape[0]
    base = pl.program_id(0) * b_blk

    for i in range(b_blk):                               # static unroll over batch block
        s0 = (base + i) * 5
        scale = scal_ref[s0 + 0]                         # eta / (n * d_in)
        beta = scal_ref[s0 + 1]
        omb = scal_ref[s0 + 2]                           # 1 - beta
        tau = scal_ref[s0 + 3]
        theta = scal_ref[s0 + 4]

        Xi = x_ref[i]                                    # (n, d_in)
        Xbi = xbar_ref[i]                                # (n, d_in)
        Yi = y_ref[i]                                    # (m, d_in)
        Qi = q_ref[i]                                    # (n, n)
        Ai = a_ref[i]                                    # (m, n)
        clu = clu_ref[i]                                 # (n, 3) = c | l | u
        ci, li, ui = clu[:, 0:1], clu[:, 1:2], clu[:, 2:3]
        bi = b_ref[i]                                    # (m, 1)

        Wkx = jax.nn.softmax(wkx_ref[i], axis=0)         # softmax over in_size (torch dim=1)
        Ws = jax.nn.softmax(ws_ref[i], axis=0)

        # ---------------- X layer ----------------
        Xm = omb * Xbi + beta * Xi
        G = jnp.dot(Qi,
                    jnp.dot(Xm, Wkx, preferred_element_type=jnp.float32),
                    preferred_element_type=jnp.float32)  # (n, d_out)
        Xn = Xi - scale * (G + ci)
        Xn = jnp.minimum(jnp.maximum(Xn, li), ui)        # clamp(l, u)
        Xbn = omb * Xbi + beta * Xn

        # ---------------- Y layer ----------------
        Xt = theta * (Xn - Xi) + Xn
        AXW = jnp.dot(jnp.dot(Ai, Xt, preferred_element_type=jnp.float32),
                      Ws, preferred_element_type=jnp.float32)   # (m, d_out)
        Yn = jnp.maximum(Yi + tau * (bi - AXW), 0.0)     # ReLU

        xnew_ref[i] = Xn.astype(xnew_ref.dtype)
        xbarnew_ref[i] = Xbn.astype(xbarnew_ref.dtype)
        ynew_ref[i] = Yn.astype(ynew_ref.dtype)


def _pick_batch_block(bs, per_batch_bytes, budget_bytes=32 << 20, max_blk=64):
    """Largest divisor of bs fitting the double-buffered VMEM budget; keep >=2 grid steps."""
    best = 1
    for d in range(1, min(bs, max_blk) + 1):
        if bs % d == 0 and 2 * d * per_batch_bytes <= budget_bytes:
            best = d
    if bs > 1 and best == bs:
        for d in range(best - 1, 0, -1):
            if bs % d == 0:
                best = d
                break
    return best


def pdqp_layer_2_full(X, X_bar, Y, Q, A, c, b, l, u, params, idx,
                      in_size, out_size):
    """Forward of PDQP_Layer_2_full -> (X_new, X_bar_new, Y_new)."""
    bs, n, d_in = X.shape
    m = Y.shape[1]
    assert d_in == in_size
    # The torch module implicitly requires out_size == in_size (X - eta*G and
    # the clamp against (n,1) bounds only broadcast correctly then).
    assert out_size == in_size, "PDQP_Layer_2_full requires out_size == in_size"
    nw = in_size * out_size

    # ---- glue: parameter slicing + scalar activations (tiny; plain JAX) ----
    eta = jax.nn.sigmoid(params[:, idx])
    beta = jax.nn.sigmoid(params[:, idx + 1])
    wkx = params[:, idx + 2: idx + 2 + nw].reshape(bs, in_size, out_size)
    idx_y = idx + nw + 2
    tau = jax.nn.sigmoid(params[:, idx_y])
    theta = jax.nn.sigmoid(params[:, idx_y + 1])
    ws = params[:, idx_y + 2: idx_y + 2 + nw].reshape(bs, in_size, out_size)

    scale = eta / float(n * d_in)
    scalars = jnp.stack([scale, beta, 1.0 - beta, tau, theta],
                        axis=-1).reshape(bs * 5).astype(jnp.float32)

    clu = jnp.stack([c, l, u], axis=-1)                  # (bs, n, 3)
    b3 = b[:, :, None]                                   # (bs, m, 1)

    itemsize = 4
    per_batch_bytes = itemsize * (
        2 * n * d_in + m * d_in + n * n + m * n + n * 3 + m + 2 * nw   # inputs
        + 2 * n * out_size + m * out_size)                             # outputs
    b_blk = _pick_batch_block(bs, per_batch_bytes)
    grid = (bs // b_blk,)

    def im3(g, s):                                       # scalar-prefetch ref is positional
        return (g, 0, 0)

    out_shape = (
        jax.ShapeDtypeStruct((bs, n, out_size), X.dtype),
        jax.ShapeDtypeStruct((bs, n, out_size), X.dtype),
        jax.ShapeDtypeStruct((bs, m, out_size), X.dtype),
    )

    grid_spec = pltpu.PrefetchScalarGridSpec(
        num_scalar_prefetch=1,
        grid=grid,
        in_specs=[
            pl.BlockSpec((b_blk, n, d_in), im3),             # X
            pl.BlockSpec((b_blk, n, d_in), im3),             # X_bar
            pl.BlockSpec((b_blk, m, d_in), im3),             # Y
            pl.BlockSpec((b_blk, n, n), im3),                # Q
            pl.BlockSpec((b_blk, m, n), im3),                # A
            pl.BlockSpec((b_blk, n, 3), im3),                # c|l|u packed
            pl.BlockSpec((b_blk, m, 1), im3),                # b
            pl.BlockSpec((b_blk, in_size, out_size), im3),   # Wkx logits
            pl.BlockSpec((b_blk, in_size, out_size), im3),   # Ws logits
        ],
        out_specs=[
            pl.BlockSpec((b_blk, n, out_size), im3),         # X_new
            pl.BlockSpec((b_blk, n, out_size), im3),         # X_bar_new
            pl.BlockSpec((b_blk, m, out_size), im3),         # Y_new
        ],
    )

    return pl.pallas_call(
        _pdqp2_kernel,
        out_shape=out_shape,
        grid_spec=grid_spec,
        compiler_params=pltpu.CompilerParams(
            dimension_semantics=("parallel",),
            vmem_limit_bytes=48 * 1024 * 1024),
    )(scalars, X, X_bar, Y, Q, A, clu, b3, wkx, ws)


def _reference(X, X_bar, Y, Q, A, c, b, l, u, params, idx, in_size, out_size):
    """Pure-JAX reference mirroring the PyTorch forward (left-assoc matmuls)."""
    nw = in_size * out_size
    eta = jax.nn.sigmoid(params[:, idx:idx + 1]).reshape(-1, 1, 1)
    beta = jax.nn.sigmoid(params[:, idx + 1:idx + 2]).reshape(-1, 1, 1)
    Wkx = jax.nn.softmax(
        params[:, idx + 2: idx + 2 + nw].reshape(-1, in_size, out_size), axis=1)
    n_x, d_in = X.shape[-2], X.shape[-1]
    X_m = (1 - beta) * X_bar + beta * X
    X_new = X - eta * (Q @ X_m @ Wkx + c[..., None]) / (n_x * d_in)
    X_new = jnp.clip(X_new, l[..., None], u[..., None])
    X_bar_new = (1 - beta) * X_bar + beta * X_new

    idx_y = idx + nw + 2
    tau = jax.nn.sigmoid(params[:, idx_y:idx_y + 1]).reshape(-1, 1, 1)
    theta = jax.nn.sigmoid(params[:, idx_y + 1:idx_y + 2]).reshape(-1, 1, 1)
    Ws = jax.nn.softmax(
        params[:, idx_y + 2: idx_y + 2 + nw].reshape(-1, in_size, out_size), axis=1)
    X_tmp = theta * (X_new - X) + X_new
    Y_new = jax.nn.relu(Y + tau * (b[..., None] - A @ X_tmp @ Ws))
    return X_new, X_bar_new, Y_new


if __name__ == "__main__":
    bs, n, m = 4, 16, 8
    in_size = out_size = d_in = 8
    idx = 0
    n_params = 2 * (in_size * out_size + 2)

    key = jax.random.PRNGKey(0)
    ks = jax.random.split(key, 12)
    X = jax.random.normal(ks[0], (bs, n, d_in), jnp.float32)
    X_bar = jax.random.normal(ks[1], (bs, n, d_in), jnp.float32)
    Y = jax.random.normal(ks[2], (bs, m, d_in), jnp.float32)
    Bm = jax.random.normal(ks[3], (bs, n, n), jnp.float32)
    Q = jnp.einsum("bij,bkj->bik", Bm, Bm) / n           # PSD
    A = jax.random.normal(ks[4], (bs, m, n), jnp.float32)
    c = jax.random.normal(ks[5], (bs, n), jnp.float32)
    b = jax.random.normal(ks[6], (bs, m), jnp.float32)
    l = -jnp.abs(jax.random.normal(ks[7], (bs, n), jnp.float32)) - 0.5
    u = jnp.abs(jax.random.normal(ks[8], (bs, n), jnp.float32)) + 0.5
    params = jax.random.normal(ks[9], (bs, n_params), jnp.float32)

    X_new, X_bar_new, Y_new = pdqp_layer_2_full(
        X, X_bar, Y, Q, A, c, b, l, u, params, idx, in_size, out_size)
    jax.block_until_ready((X_new, X_bar_new, Y_new))

    X_new_r, X_bar_new_r, Y_new_r = _reference(
        X, X_bar, Y, Q, A, c, b, l, u, params, idx, in_size, out_size)

    assert jnp.allclose(X_new, X_new_r, rtol=1e-5, atol=1e-5)
    assert jnp.allclose(X_bar_new, X_bar_new_r, rtol=1e-5, atol=1e-5)
    assert jnp.allclose(Y_new, Y_new_r, rtol=1e-5, atol=1e-5)

    print("KERNEL_OK")
</pallas_src>

<mosaic_0001>
module attributes {stable_mosaic.version = 11 : i64} {
  func.func @_pdqp2_kernel(%arg0: i32, %arg1: memref<20xf32, #tpu.memory_space<smem>>, %arg2: memref<2x16x8xf32, #tpu.memory_space<vmem>>, %arg3: memref<2x16x8xf32, #tpu.memory_space<vmem>>, %arg4: memref<2x8x8xf32, #tpu.memory_space<vmem>>, %arg5: memref<2x16x16xf32, #tpu.memory_space<vmem>>, %arg6: memref<2x8x16xf32, #tpu.memory_space<vmem>>, %arg7: memref<2x16x3xf32, #tpu.memory_space<vmem>>, %arg8: memref<2x8x1xf32, #tpu.memory_space<vmem>>, %arg9: memref<2x8x8xf32, #tpu.memory_space<vmem>>, %arg10: memref<2x8x8xf32, #tpu.memory_space<vmem>>, %arg11: memref<2x16x8xf32, #tpu.memory_space<vmem>>, %arg12: memref<2x16x8xf32, #tpu.memory_space<vmem>>, %arg13: memref<2x8x8xf32, #tpu.memory_space<vmem>>) attributes {dimension_semantics = [#tpu.dimension_semantics<parallel>], iteration_bounds = array<i64: 2>, scalar_prefetch = 1 : i64, scratch_operands = 0 : i64, tpu.core_type = #tpu.core_type<tc>, window_params = [{transform_indices = @transform_0, window_bounds = array<i64: 2, 16, 8>}, {transform_indices = @transform_1, window_bounds = array<i64: 2, 16, 8>}, {transform_indices = @transform_2, window_bounds = array<i64: 2, 8, 8>}, {transform_indices = @transform_3, window_bounds = array<i64: 2, 16, 16>}, {transform_indices = @transform_4, window_bounds = array<i64: 2, 8, 16>}, {transform_indices = @transform_5, window_bounds = array<i64: 2, 16, 3>}, {transform_indices = @transform_6, window_bounds = array<i64: 2, 8, 1>}, {transform_indices = @transform_7, window_bounds = array<i64: 2, 8, 8>}, {transform_indices = @transform_8, window_bounds = array<i64: 2, 8, 8>}, {transform_indices = @transform_9, window_bounds = array<i64: 2, 16, 8>}, {transform_indices = @transform_10, window_bounds = array<i64: 2, 16, 8>}, {transform_indices = @transform_11, window_bounds = array<i64: 2, 8, 8>}]} {
    %c2_i32 = arith.constant 2 : i32
    %0 = arith.muli %arg0, %c2_i32 : i32
    %c0_i32 = arith.constant 0 : i32
    %1 = arith.addi %0, %c0_i32 : i32
    %c5_i32 = arith.constant 5 : i32
    %2 = arith.muli %1, %c5_i32 : i32
    %c0_i32_0 = arith.constant 0 : i32
    %3 = arith.addi %2, %c0_i32_0 : i32
    %4 = arith.index_cast %3 : i32 to index
    %5 = memref.load %arg1[%4] : memref<20xf32, #tpu.memory_space<smem>>
    %c1_i32 = arith.constant 1 : i32
    %6 = arith.addi %2, %c1_i32 : i32
    %7 = arith.index_cast %6 : i32 to index
    %8 = memref.load %arg1[%7] : memref<20xf32, #tpu.memory_space<smem>>
    %c2_i32_1 = arith.constant 2 : i32
    %9 = arith.addi %2, %c2_i32_1 : i32
    %10 = arith.index_cast %9 : i32 to index
    %11 = memref.load %arg1[%10] : memref<20xf32, #tpu.memory_space<smem>>
    %c3_i32 = arith.constant 3 : i32
    %12 = arith.addi %2, %c3_i32 : i32
    %13 = arith.index_cast %12 : i32 to index
    %14 = memref.load %arg1[%13] : memref<20xf32, #tpu.memory_space<smem>>
    %c4_i32 = arith.constant 4 : i32
    %15 = arith.addi %2, %c4_i32 : i32
    %16 = arith.index_cast %15 : i32 to index
    %17 = memref.load %arg1[%16] : memref<20xf32, #tpu.memory_space<smem>>
    %c0 = arith.constant 0 : index
    %c0_2 = arith.constant 0 : index
    %c0_3 = arith.constant 0 : index
    %18 = vector.load %arg2[%c0, %c0_2, %c0_3] : memref<2x16x8xf32, #tpu.memory_space<vmem>>, vector<1x16x8xf32>
    %19 = vector.shape_cast %18 : vector<1x16x8xf32> to vector<16x8xf32>
    %c0_4 = arith.constant 0 : index
    %c0_5 = arith.constant 0 : index
    %c0_6 = arith.constant 0 : index
    %20 = vector.load %arg3[%c0_4, %c0_5, %c0_6] : memref<2x16x8xf32, #tpu.memory_space<vmem>>, vector<1x16x8xf32>
    %21 = vector.shape_cast %20 : vector<1x16x8xf32> to vector<16x8xf32>
    %c0_7 = arith.constant 0 : index
    %c0_8 = arith.constant 0 : index
    %c0_9 = arith.constant 0 : index
    %22 = vector.load %arg4[%c0_7, %c0_8, %c0_9] : memref<2x8x8xf32, #tpu.memory_space<vmem>>, vector<1x8x8xf32>
    %23 = vector.shape_cast %22 : vector<1x8x8xf32> to vector<8x8xf32>
    %c0_10 = arith.constant 0 : index
    %c0_11 = arith.constant 0 : index
    %c0_12 = arith.constant 0 : index
    %24 = vector.load %arg5[%c0_10, %c0_11, %c0_12] : memref<2x16x16xf32, #tpu.memory_space<vmem>>, vector<1x16x16xf32>
    %25 = vector.shape_cast %24 : vector<1x16x16xf32> to vector<16x16xf32>
    %c0_13 = arith.constant 0 : index
    %c0_14 = arith.constant 0 : index
    %c0_15 = arith.constant 0 : index
    %26 = vector.load %arg6[%c0_13, %c0_14, %c0_15] : memref<2x8x16xf32, #tpu.memory_space<vmem>>, vector<1x8x16xf32>
    %27 = vector.shape_cast %26 : vector<1x8x16xf32> to vector<8x16xf32>
    %c0_16 = arith.constant 0 : index
    %c0_17 = arith.constant 0 : index
    %c0_18 = arith.constant 0 : index
    %28 = vector.load %arg7[%c0_16, %c0_17, %c0_18] : memref<2x16x3xf32, #tpu.memory_space<vmem>>, vector<1x16x3xf32>
    %29 = vector.shape_cast %28 : vector<1x16x3xf32> to vector<16x3xf32>
    %30 = vector.extract_strided_slice %29 {offsets = [0, 0], sizes = [16, 1], strides = [1, 1]} : vector<16x3xf32> to vector<16x1xf32>
    %31 = vector.extract_strided_slice %29 {offsets = [0, 1], sizes = [16, 1], strides = [1, 1]} : vector<16x3xf32> to vector<16x1xf32>
    %32 = vector.extract_strided_slice %29 {offsets = [0, 2], sizes = [16, 1], strides = [1, 1]} : vector<16x3xf32> to vector<16x1xf32>
    %c0_19 = arith.constant 0 : index
    %c0_20 = arith.constant 0 : index
    %c0_21 = arith.constant 0 : index
    %33 = vector.load %arg8[%c0_19, %c0_20, %c0_21] : memref<2x8x1xf32, #tpu.memory_space<vmem>>, vector<1x8x1xf32>
    %34 = vector.shape_cast %33 : vector<1x8x1xf32> to vector<8x1xf32>
    %c0_22 = arith.constant 0 : index
    %c0_23 = arith.constant 0 : index
    %c0_24 = arith.constant 0 : index
    %35 = vector.load %arg9[%c0_22, %c0_23, %c0_24] : memref<2x8x8xf32, #tpu.memory_space<vmem>>, vector<1x8x8xf32>
    %36 = vector.shape_cast %35 : vector<1x8x8xf32> to vector<8x8xf32>
    %cst = arith.constant dense<0xFF800000> : vector<8xf32>
    %37 = vector.multi_reduction <maximumf>, %36, %cst [0] : vector<8x8xf32> to vector<8xf32>
    %cst_25 = arith.constant 0xFF800000 : f32
    %38 = vector.broadcast %cst_25 : f32 to vector<8xf32>
    %39 = arith.maximumf %38, %37 : vector<8xf32>
    %40 = vector.shape_cast %39 : vector<8xf32> to vector<1x8xf32>
    %41 = vector.broadcast %40 : vector<1x8xf32> to vector<8x8xf32>
    %42 = arith.subf %36, %41 : vector<8x8xf32>
    %43 = math.exp %42 : vector<8x8xf32>
    %cst_26 = arith.constant dense<0.000000e+00> : vector<8xf32>
    %44 = vector.multi_reduction <add>, %43, %cst_26 [0] : vector<8x8xf32> to vector<8xf32>
    %45 = vector.shape_cast %44 : vector<8xf32> to vector<1x8xf32>
    %46 = vector.broadcast %45 : vector<1x8xf32> to vector<8x8xf32>
    %47 = arith.divf %43, %46 : vector<8x8xf32>
    %c0_27 = arith.constant 0 : index
    %c0_28 = arith.constant 0 : index
    %c0_29 = arith.constant 0 : index
    %48 = vector.load %arg10[%c0_27, %c0_28, %c0_29] : memref<2x8x8xf32, #tpu.memory_space<vmem>>, vector<1x8x8xf32>
    %49 = vector.shape_cast %48 : vector<1x8x8xf32> to vector<8x8xf32>
    %cst_30 = arith.constant dense<0xFF800000> : vector<8xf32>
    %50 = vector.multi_reduction <maximumf>, %49, %cst_30 [0] : vector<8x8xf32> to vector<8xf32>
    %cst_31 = arith.constant 0xFF800000 : f32
    %51 = vector.broadcast %cst_31 : f32 to vector<8xf32>
    %52 = arith.maximumf %51, %50 : vector<8xf32>
    %53 = vector.shape_cast %52 : vector<8xf32> to vector<1x8xf32>
    %54 = vector.broadcast %53 : vector<1x8xf32> to vector<8x8xf32>
    %55 = arith.subf %49, %54 : vector<8x8xf32>
    %56 = math.exp %55 : vector<8x8xf32>
    %cst_32 = arith.constant dense<0.000000e+00> : vector<8xf32>
    %57 = vector.multi_reduction <add>, %56, %cst_32 [0] : vector<8x8xf32> to vector<8xf32>
    %58 = vector.shape_cast %57 : vector<8xf32> to vector<1x8xf32>
    %59 = vector.broadcast %58 : vector<1x8xf32> to vector<8x8xf32>
    %60 = arith.divf %56, %59 : vector<8x8xf32>
    %61 = vector.broadcast %11 : f32 to vector<16x8xf32>
    %62 = arith.mulf %61, %21 : vector<16x8xf32>
    %63 = vector.broadcast %8 : f32 to vector<16x8xf32>
    %64 = arith.mulf %63, %19 : vector<16x8xf32>
    %65 = arith.addf %62, %64 : vector<16x8xf32>
    %cst_33 = arith.constant dense<0.000000e+00> : vector<16x8xf32>
    %66 = tpu.matmul %65, %47, %cst_33 {dimension_numbers = #tpu.dot_dimension_numbers<[1], [0], [0], [1], [0, 0, 1, 1], [], []>} : vector<16x8xf32>, vector<8x8xf32>, vector<16x8xf32> -> vector<16x8xf32>
    %cst_34 = arith.constant dense<0.000000e+00> : vector<16x8xf32>
    %67 = tpu.matmul %25, %66, %cst_34 {dimension_numbers = #tpu.dot_dimension_numbers<[1], [0], [0], [1], [0, 0, 1, 1], [], []>} : vector<16x16xf32>, vector<16x8xf32>, vector<16x8xf32> -> vector<16x8xf32>
    %68 = vector.broadcast %30 : vector<16x1xf32> to vector<16x8xf32>
    %69 = arith.addf %67, %68 : vector<16x8xf32>
    %70 = vector.broadcast %5 : f32 to vector<16x8xf32>
    %71 = arith.mulf %70, %69 : vector<16x8xf32>
    %72 = arith.subf %19, %71 : vector<16x8xf32>
    %73 = vector.broadcast %31 : vector<16x1xf32> to vector<16x8xf32>
    %74 = arith.maximumf %72, %73 : vector<16x8xf32>
    %75 = vector.broadcast %32 : vector<16x1xf32> to vector<16x8xf32>
    %76 = arith.minimumf %74, %75 : vector<16x8xf32>
    %77 = vector.broadcast %11 : f32 to vector<16x8xf32>
    %78 = arith.mulf %77, %21 : vector<16x8xf32>
    %79 = vector.broadcast %8 : f32 to vector<16x8xf32>
    %80 = arith.mulf %79, %76 : vector<16x8xf32>
    %81 = arith.addf %78, %80 : vector<16x8xf32>
    %82 = arith.subf %76, %19 : vector<16x8xf32>
    %83 = vector.broadcast %17 : f32 to vector<16x8xf32>
    %84 = arith.mulf %83, %82 : vector<16x8xf32>
    %85 = arith.addf %84, %76 : vector<16x8xf32>
    %cst_35 = arith.constant dense<0.000000e+00> : vector<8x8xf32>
    %86 = tpu.matmul %27, %85, %cst_35 {dimension_numbers = #tpu.dot_dimension_numbers<[1], [0], [0], [1], [0, 0, 1, 1], [], []>} : vector<8x16xf32>, vector<16x8xf32>, vector<8x8xf32> -> vector<8x8xf32>
    %cst_36 = arith.constant dense<0.000000e+00> : vector<8x8xf32>
    %87 = tpu.matmul %86, %60, %cst_36 {dimension_numbers = #tpu.dot_dimension_numbers<[1], [0], [0], [1], [0, 0, 1, 1], [], []>} : vector<8x8xf32>, vector<8x8xf32>, vector<8x8xf32> -> vector<8x8xf32>
    %88 = vector.broadcast %34 : vector<8x1xf32> to vector<8x8xf32>
    %89 = arith.subf %88, %87 : vector<8x8xf32>
    %90 = vector.broadcast %14 : f32 to vector<8x8xf32>
    %91 = arith.mulf %90, %89 : vector<8x8xf32>
    %92 = arith.addf %23, %91 : vector<8x8xf32>
    %cst_37 = arith.constant 0.000000e+00 : f32
    %93 = vector.broadcast %cst_37 : f32 to vector<8x8xf32>
    %94 = arith.maximumf %92, %93 : vector<8x8xf32>
    %c0_38 = arith.constant 0 : index
    %c0_39 = arith.constant 0 : index
    %c0_40 = arith.constant 0 : index
    %95 = vector.load %arg11[%c0_38, %c0_39, %c0_40] : memref<2x16x8xf32, #tpu.memory_space<vmem>>, vector<1x16x8xf32>
    %96 = vector.shape_cast %95 : vector<1x16x8xf32> to vector<16x8xf32>
    %97 = vector.shape_cast %76 : vector<16x8xf32> to vector<1x16x8xf32>
    tpu.vector_store %arg11[%c0_38, %c0_39, %c0_40], %97 {strides = array<i32>} : memref<2x16x8xf32, #tpu.memory_space<vmem>>, vector<1x16x8xf32>,
    %c0_41 = arith.constant 0 : index
    %c0_42 = arith.constant 0 : index
    %c0_43 = arith.constant 0 : index
    %98 = vector.load %arg12[%c0_41, %c0_42, %c0_43] : memref<2x16x8xf32, #tpu.memory_space<vmem>>, vector<1x16x8xf32>
    %99 = vector.shape_cast %98 : vector<1x16x8xf32> to vector<16x8xf32>
    %100 = vector.shape_cast %81 : vector<16x8xf32> to vector<1x16x8xf32>
    tpu.vector_store %arg12[%c0_41, %c0_42, %c0_43], %100 {strides = array<i32>} : memref<2x16x8xf32, #tpu.memory_space<vmem>>, vector<1x16x8xf32>,
    %c0_44 = arith.constant 0 : index
    %c0_45 = arith.constant 0 : index
    %c0_46 = arith.constant 0 : index
    %101 = vector.load %arg13[%c0_44, %c0_45, %c0_46] : memref<2x8x8xf32, #tpu.memory_space<vmem>>, vector<1x8x8xf32>
    %102 = vector.shape_cast %101 : vector<1x8x8xf32> to vector<8x8xf32>
    %103 = vector.shape_cast %94 : vector<8x8xf32> to vector<1x8x8xf32>
    tpu.vector_store %arg13[%c0_44, %c0_45, %c0_46], %103 {strides = array<i32>} : memref<2x8x8xf32, #tpu.memory_space<vmem>>, vector<1x8x8xf32>,
    %c1_i32_47 = arith.constant 1 : i32
    %104 = arith.addi %0, %c1_i32_47 : i32
    %c5_i32_48 = arith.constant 5 : i32
    %105 = arith.muli %104, %c5_i32_48 : i32
    %c0_i32_49 = arith.constant 0 : i32
    %106 = arith.addi %105, %c0_i32_49 : i32
    %107 = arith.index_cast %106 : i32 to index
    %108 = memref.load %arg1[%107] : memref<20xf32, #tpu.memory_space<smem>>
    %c1_i32_50 = arith.constant 1 : i32
    %109 = arith.addi %105, %c1_i32_50 : i32
    %110 = arith.index_cast %109 : i32 to index
    %111 = memref.load %arg1[%110] : memref<20xf32, #tpu.memory_space<smem>>
    %c2_i32_51 = arith.constant 2 : i32
    %112 = arith.addi %105, %c2_i32_51 : i32
    %113 = arith.index_cast %112 : i32 to index
    %114 = memref.load %arg1[%113] : memref<20xf32, #tpu.memory_space<smem>>
    %c3_i32_52 = arith.constant 3 : i32
    %115 = arith.addi %105, %c3_i32_52 : i32
    %116 = arith.index_cast %115 : i32 to index
    %117 = memref.load %arg1[%116] : memref<20xf32, #tpu.memory_space<smem>>
    %c4_i32_53 = arith.constant 4 : i32
    %118 = arith.addi %105, %c4_i32_53 : i32
    %119 = arith.index_cast %118 : i32 to index
    %120 = memref.load %arg1[%119] : memref<20xf32, #tpu.memory_space<smem>>
    %c1 = arith.constant 1 : index
    %c0_54 = arith.constant 0 : index
    %c0_55 = arith.constant 0 : index
    %121 = vector.load %arg2[%c1, %c0_54, %c0_55] : memref<2x16x8xf32, #tpu.memory_space<vmem>>, vector<1x16x8xf32>
    %122 = vector.shape_cast %121 : vector<1x16x8xf32> to vector<16x8xf32>
    %c1_56 = arith.constant 1 : index
    %c0_57 = arith.constant 0 : index
    %c0_58 = arith.constant 0 : index
    %123 = vector.load %arg3[%c1_56, %c0_57, %c0_58] : memref<2x16x8xf32, #tpu.memory_space<vmem>>, vector<1x16x8xf32>
    %124 = vector.shape_cast %123 : vector<1x16x8xf32> to vector<16x8xf32>
    %c1_59 = arith.constant 1 : index
    %c0_60 = arith.constant 0 : index
    %c0_61 = arith.constant 0 : index
    %125 = vector.load %arg4[%c1_59, %c0_60, %c0_61] : memref<2x8x8xf32, #tpu.memory_space<vmem>>, vector<1x8x8xf32>
    %126 = vector.shape_cast %125 : vector<1x8x8xf32> to vector<8x8xf32>
    %c1_62 = arith.constant 1 : index
    %c0_63 = arith.constant 0 : index
    %c0_64 = arith.constant 0 : index
    %127 = vector.load %arg5[%c1_62, %c0_63, %c0_64] : memref<2x16x16xf32, #tpu.memory_space<vmem>>, vector<1x16x16xf32>
    %128 = vector.shape_cast %127 : vector<1x16x16xf32> to vector<16x16xf32>
    %c1_65 = arith.constant 1 : index
    %c0_66 = arith.constant 0 : index
    %c0_67 = arith.constant 0 : index
    %129 = vector.load %arg6[%c1_65, %c0_66, %c0_67] : memref<2x8x16xf32, #tpu.memory_space<vmem>>, vector<1x8x16xf32>
    %130 = vector.shape_cast %129 : vector<1x8x16xf32> to vector<8x16xf32>
    %c1_68 = arith.constant 1 : index
    %c0_69 = arith.constant 0 : index
    %c0_70 = arith.constant 0 : index
    %131 = vector.load %arg7[%c1_68, %c0_69, %c0_70] : memref<2x16x3xf32, #tpu.memory_space<vmem>>, vector<1x16x3xf32>
    %132 = vector.shape_cast %131 : vector<1x16x3xf32> to vector<16x3xf32>
    %133 = vector.extract_strided_slice %132 {offsets = [0, 0], sizes = [16, 1], strides = [1, 1]} : vector<16x3xf32> to vector<16x1xf32>
    %134 = vector.extract_strided_slice %132 {offsets = [0, 1], sizes = [16, 1], strides = [1, 1]} : vector<16x3xf32> to vector<16x1xf32>
    %135 = vector.extract_strided_slice %132 {offsets = [0, 2], sizes = [16, 1], strides = [1, 1]} : vector<16x3xf32> to vector<16x1xf32>
    %c1_71 = arith.constant 1 : index
    %c0_72 = arith.constant 0 : index
    %c0_73 = arith.constant 0 : index
    %136 = vector.load %arg8[%c1_71, %c0_72, %c0_73] : memref<2x8x1xf32, #tpu.memory_space<vmem>>, vector<1x8x1xf32>
    %137 = vector.shape_cast %136 : vector<1x8x1xf32> to vector<8x1xf32>
    %c1_74 = arith.constant 1 : index
    %c0_75 = arith.constant 0 : index
    %c0_76 = arith.constant 0 : index
    %138 = vector.load %arg9[%c1_74, %c0_75, %c0_76] : memref<2x8x8xf32, #tpu.memory_space<vmem>>, vector<1x8x8xf32>
    %139 = vector.shape_cast %138 : vector<1x8x8xf32> to vector<8x8xf32>
    %cst_77 = arith.constant dense<0xFF800000> : vector<8xf32>
    %140 = vector.multi_reduction <maximumf>, %139, %cst_77 [0] : vector<8x8xf32> to vector<8xf32>
    %cst_78 = arith.constant 0xFF800000 : f32
    %141 = vector.broadcast %cst_78 : f32 to vector<8xf32>
    %142 = arith.maximumf %141, %140 : vector<8xf32>
    %143 = vector.shape_cast %142 : vector<8xf32> to vector<1x8xf32>
    %144 = vector.broadcast %143 : vector<1x8xf32> to vector<8x8xf32>
    %145 = arith.subf %139, %144 : vector<8x8xf32>
    %146 = math.exp %145 : vector<8x8xf32>
    %cst_79 = arith.constant dense<0.000000e+00> : vector<8xf32>
    %147 = vector.multi_reduction <add>, %146, %cst_79 [0] : vector<8x8xf32> to vector<8xf32>
    %148 = vector.shape_cast %147 : vector<8xf32> to vector<1x8xf32>
    %149 = vector.broadcast %148 : vector<1x8xf32> to vector<8x8xf32>
    %150 = arith.divf %146, %149 : vector<8x8xf32>
    %c1_80 = arith.constant 1 : index
    %c0_81 = arith.constant 0 : index
    %c0_82 = arith.constant 0 : index
    %151 = vector.load %arg10[%c1_80, %c0_81, %c0_82] : memref<2x8x8xf32, #tpu.memory_space<vmem>>, vector<1x8x8xf32>
    %152 = vector.shape_cast %151 : vector<1x8x8xf32> to vector<8x8xf32>
    %cst_83 = arith.constant dense<0xFF800000> : vector<8xf32>
    %153 = vector.multi_reduction <maximumf>, %152, %cst_83 [0] : vector<8x8xf32> to vector<8xf32>
    %cst_84 = arith.constant 0xFF800000 : f32
    %154 = vector.broadcast %cst_84 : f32 to vector<8xf32>
    %155 = arith.maximumf %154, %153 : vector<8xf32>
    %156 = vector.shape_cast %155 : vector<8xf32> to vector<1x8xf32>
    %157 = vector.broadcast %156 : vector<1x8xf32> to vector<8x8xf32>
    %158 = arith.subf %152, %157 : vector<8x8xf32>
    %159 = math.exp %158 : vector<8x8xf32>
    %cst_85 = arith.constant dense<0.000000e+00> : vector<8xf32>
    %160 = vector.multi_reduction <add>, %159, %cst_85 [0] : vector<8x8xf32> to vector<8xf32>
    %161 = vector.shape_cast %160 : vector<8xf32> to vector<1x8xf32>
    %162 = vector.broadcast %161 : vector<1x8xf32> to vector<8x8xf32>
    %163 = arith.divf %159, %162 : vector<8x8xf32>
    %164 = vector.broadcast %114 : f32 to vector<16x8xf32>
    %165 = arith.mulf %164, %124 : vector<16x8xf32>
    %166 = vector.broadcast %111 : f32 to vector<16x8xf32>
    %167 = arith.mulf %166, %122 : vector<16x8xf32>
    %168 = arith.addf %165, %167 : vector<16x8xf32>
    %cst_86 = arith.constant dense<0.000000e+00> : vector<16x8xf32>
    %169 = tpu.matmul %168, %150, %cst_86 {dimension_numbers = #tpu.dot_dimension_numbers<[1], [0], [0], [1], [0, 0, 1, 1], [], []>} : vector<16x8xf32>, vector<8x8xf32>, vector<16x8xf32> -> vector<16x8xf32>
    %cst_87 = arith.constant dense<0.000000e+00> : vector<16x8xf32>
    %170 = tpu.matmul %128, %169, %cst_87 {dimension_numbers = #tpu.dot_dimension_numbers<[1], [0], [0], [1], [0, 0, 1, 1], [], []>} : vector<16x16xf32>, vector<16x8xf32>, vector<16x8xf32> -> vector<16x8xf32>
    %171 = vector.broadcast %133 : vector<16x1xf32> to vector<16x8xf32>
    %172 = arith.addf %170, %171 : vector<16x8xf32>
    %173 = vector.broadcast %108 : f32 to vector<16x8xf32>
    %174 = arith.mulf %173, %172 : vector<16x8xf32>
    %175 = arith.subf %122, %174 : vector<16x8xf32>
    %176 = vector.broadcast %134 : vector<16x1xf32> to vector<16x8xf32>
    %177 = arith.maximumf %175, %176 : vector<16x8xf32>
    %178 = vector.broadcast %135 : vector<16x1xf32> to vector<16x8xf32>
    %179 = arith.minimumf %177, %178 : vector<16x8xf32>
    %180 = vector.broadcast %114 : f32 to vector<16x8xf32>
    %181 = arith.mulf %180, %124 : vector<16x8xf32>
    %182 = vector.broadcast %111 : f32 to vector<16x8xf32>
    %183 = arith.mulf %182, %179 : vector<16x8xf32>
    %184 = arith.addf %181, %183 : vector<16x8xf32>
    %185 = arith.subf %179, %122 : vector<16x8xf32>
    %186 = vector.broadcast %120 : f32 to vector<16x8xf32>
    %187 = arith.mulf %186, %185 : vector<16x8xf32>
    %188 = arith.addf %187, %179 : vector<16x8xf32>
    %cst_88 = arith.constant dense<0.000000e+00> : vector<8x8xf32>
    %189 = tpu.matmul %130, %188, %cst_88 {dimension_numbers = #tpu.dot_dimension_numbers<[1], [0], [0], [1], [0, 0, 1, 1], [], []>} : vector<8x16xf32>, vector<16x8xf32>, vector<8x8xf32> -> vector<8x8xf32>
    %cst_89 = arith.constant dense<0.000000e+00> : vector<8x8xf32>
    %190 = tpu.matmul %189, %163, %cst_89 {dimension_numbers = #tpu.dot_dimension_numbers<[1], [0], [0], [1], [0, 0, 1, 1], [], []>} : vector<8x8xf32>, vector<8x8xf32>, vector<8x8xf32> -> vector<8x8xf32>
    %191 = vector.broadcast %137 : vector<8x1xf32> to vector<8x8xf32>
    %192 = arith.subf %191, %190 : vector<8x8xf32>
    %193 = vector.broadcast %117 : f32 to vector<8x8xf32>
    %194 = arith.mulf %193, %192 : vector<8x8xf32>
    %195 = arith.addf %126, %194 : vector<8x8xf32>
    %cst_90 = arith.constant 0.000000e+00 : f32
    %196 = vector.broadcast %cst_90 : f32 to vector<8x8xf32>
    %197 = arith.maximumf %195, %196 : vector<8x8xf32>
    %c1_91 = arith.constant 1 : index
    %c0_92 = arith.constant 0 : index
    %c0_93 = arith.constant 0 : index
    %198 = vector.load %arg11[%c1_91, %c0_92, %c0_93] : memref<2x16x8xf32, #tpu.memory_space<vmem>>, vector<1x16x8xf32>
    %199 = vector.shape_cast %198 : vector<1x16x8xf32> to vector<16x8xf32>
    %200 = vector.shape_cast %179 : vector<16x8xf32> to vector<1x16x8xf32>
    tpu.vector_store %arg11[%c1_91, %c0_92, %c0_93], %200 {strides = array<i32>} : memref<2x16x8xf32, #tpu.memory_space<vmem>>, vector<1x16x8xf32>,
    %c1_94 = arith.constant 1 : index
    %c0_95 = arith.constant 0 : index
    %c0_96 = arith.constant 0 : index
    %201 = vector.load %arg12[%c1_94, %c0_95, %c0_96] : memref<2x16x8xf32, #tpu.memory_space<vmem>>, vector<1x16x8xf32>
    %202 = vector.shape_cast %201 : vector<1x16x8xf32> to vector<16x8xf32>
    %203 = vector.shape_cast %184 : vector<16x8xf32> to vector<1x16x8xf32>
    tpu.vector_store %arg12[%c1_94, %c0_95, %c0_96], %203 {strides = array<i32>} : memref<2x16x8xf32, #tpu.memory_space<vmem>>, vector<1x16x8xf32>,
    %c1_97 = arith.constant 1 : index
    %c0_98 = arith.constant 0 : index
    %c0_99 = arith.constant 0 : index
    %204 = vector.load %arg13[%c1_97, %c0_98, %c0_99] : memref<2x8x8xf32, #tpu.memory_space<vmem>>, vector<1x8x8xf32>
    %205 = vector.shape_cast %204 : vector<1x8x8xf32> to vector<8x8xf32>
    %206 = vector.shape_cast %197 : vector<8x8xf32> to vector<1x8x8xf32>
    tpu.vector_store %arg13[%c1_97, %c0_98, %c0_99], %206 {strides = array<i32>} : memref<2x8x8xf32, #tpu.memory_space<vmem>>, vector<1x8x8xf32>,
    return
  }
  func.func @transform_0(%arg0: i32, %arg1: memref<20xf32, #tpu.memory_space<smem>>) -> (i32, i32, i32) {
    %c0_i32 = arith.constant 0 : i32
    %c0_i32_0 = arith.constant 0 : i32
    %c0_i32_1 = arith.constant 0 : i32
    return %arg0, %c0_i32, %c0_i32_0 : i32, i32, i32
  }
  func.func @transform_1(%arg0: i32, %arg1: memref<20xf32, #tpu.memory_space<smem>>) -> (i32, i32, i32) {
    %c0_i32 = arith.constant 0 : i32
    %c0_i32_0 = arith.constant 0 : i32
    %c0_i32_1 = arith.constant 0 : i32
    return %arg0, %c0_i32, %c0_i32_0 : i32, i32, i32
  }
  func.func @transform_2(%arg0: i32, %arg1: memref<20xf32, #tpu.memory_space<smem>>) -> (i32, i32, i32) {
    %c0_i32 = arith.constant 0 : i32
    %c0_i32_0 = arith.constant 0 : i32
    %c0_i32_1 = arith.constant 0 : i32
    return %arg0, %c0_i32, %c0_i32_0 : i32, i32, i32
  }
  func.func @transform_3(%arg0: i32, %arg1: memref<20xf32, #tpu.memory_space<smem>>) -> (i32, i32, i32) {
    %c0_i32 = arith.constant 0 : i32
    %c0_i32_0 = arith.constant 0 : i32
    %c0_i32_1 = arith.constant 0 : i32
    return %arg0, %c0_i32, %c0_i32_0 : i32, i32, i32
  }
  func.func @transform_4(%arg0: i32, %arg1: memref<20xf32, #tpu.memory_space<smem>>) -> (i32, i32, i32) {
    %c0_i32 = arith.constant 0 : i32
    %c0_i32_0 = arith.constant 0 : i32
    %c0_i32_1 = arith.constant 0 : i32
    return %arg0, %c0_i32, %c0_i32_0 : i32, i32, i32
  }
  func.func @transform_5(%arg0: i32, %arg1: memref<20xf32, #tpu.memory_space<smem>>) -> (i32, i32, i32) {
    %c0_i32 = arith.constant 0 : i32
    %c0_i32_0 = arith.constant 0 : i32
    %c0_i32_1 = arith.constant 0 : i32
    return %arg0, %c0_i32, %c0_i32_0 : i32, i32, i32
  }
  func.func @transform_6(%arg0: i32, %arg1: memref<20xf32, #tpu.memory_space<smem>>) -> (i32, i32, i32) {
    %c0_i32 = arith.constant 0 : i32
    %c0_i32_0 = arith.constant 0 : i32
    %c0_i32_1 = arith.constant 0 : i32
    return %arg0, %c0_i32, %c0_i32_0 : i32, i32, i32
  }
  func.func @transform_7(%arg0: i32, %arg1: memref<20xf32, #tpu.memory_space<smem>>) -> (i32, i32, i32) {
    %c0_i32 = arith.constant 0 : i32
    %c0_i32_0 = arith.constant 0 : i32
    %c0_i32_1 = arith.constant 0 : i32
    return %arg0, %c0_i32, %c0_i32_0 : i32, i32, i32
  }
  func.func @transform_8(%arg0: i32, %arg1: memref<20xf32, #tpu.memory_space<smem>>) -> (i32, i32, i32) {
    %c0_i32 = arith.constant 0 : i32
    %c0_i32_0 = arith.constant 0 : i32
    %c0_i32_1 = arith.constant 0 : i32
    return %arg0, %c0_i32, %c0_i32_0 : i32, i32, i32
  }
  func.func @transform_9(%arg0: i32, %arg1: memref<20xf32, #tpu.memory_space<smem>>) -> (i32, i32, i32) {
    %c0_i32 = arith.constant 0 : i32
    %c0_i32_0 = arith.constant 0 : i32
    %c0_i32_1 = arith.constant 0 : i32
    return %arg0, %c0_i32, %c0_i32_0 : i32, i32, i32
  }
  func.func @transform_10(%arg0: i32, %arg1: memref<20xf32, #tpu.memory_space<smem>>) -> (i32, i32, i32) {
    %c0_i32 = arith.constant 0 : i32
    %c0_i32_0 = arith.constant 0 : i32
    %c0_i32_1 = arith.constant 0 : i32
    return %arg0, %c0_i32, %c0_i32_0 : i32, i32, i32
  }
  func.func @transform_11(%arg0: i32, %arg1: memref<20xf32, #tpu.memory_space<smem>>) -> (i32, i32, i32) {
    %c0_i32 = arith.constant 0 : i32
    %c0_i32_0 = arith.constant 0 : i32
    %c0_i32_1 = arith.constant 0 : i32
    return %arg0, %c0_i32, %c0_i32_0 : i32, i32, i32
  }
}

</mosaic_0001>

<bundles_post_ra>
// kernel: tpu_custom_call.1
= control target key start
LH: loop header
LB: loop body
LE: loop exit
PB: predicated region body
PF: predicated region fallthrough
CT: control target
= control target key end

     0   :  { %s2489_s0 = inlined_call_operand.vmem [shape: f32[20], index: 0, kind: input, shape index: {}]   ;;  %s2490_s1 = inlined_call_operand.vmem [shape: f32[4,16,8], index: 1, kind: input, shape index: {}]   ;;  %s2491_s2 = inlined_call_operand.vmem [shape: f32[4,16,8], index: 2, kind: input, shape index: {}]   ;;  %s2492_s3 = inlined_call_operand.vmem [shape: f32[4,8,8], index: 3, kind: input, shape index: {}]   ;;  %s2493_s4 = inlined_call_operand.vmem [shape: f32[4,16,16], index: 4, kind: input, shape index: {}]   ;;  %s2494_s5 = inlined_call_operand.vmem [shape: f32[4,8,16], index: 5, kind: input, shape index: {}]   ;;  %s2495_s6 = inlined_call_operand.vmem [shape: f32[4,16,3], index: 6, kind: input, shape index: {}]   ;;  %s2496_s7 = inlined_call_operand.vmem [shape: f32[4,8,1], index: 7, kind: input, shape index: {}]   ;;  %s2497_s8 = inlined_call_operand.vmem [shape: f32[4,8,8], index: 8, kind: input, shape index: {}]   ;;  %s2498_s9 = inlined_call_operand.vmem [shape: f32[4,8,8], index: 9, kind: input, shape index: {}]   ;;  %s2499_s10 = inlined_call_operand.vmem [shape: f32[4,16,8], index: 10, kind: output, shape index: {0}]   ;;  %s2500_s11 = inlined_call_operand.vmem [shape: f32[4,16,8], index: 11, kind: output, shape index: {1}]   ;;  %s2501_s12 = inlined_call_operand.hbm [shape: f32[4,8,8], index: 12, kind: output, shape index: {2}]  }
   0x1   :  { %2507 = sst [smem:[#allocation13_spill]] %s2490_s1  ;;  %s18_s23 = sshll.u32 %s2489_s0, 4  ;;  %s19_s23 = int_to_ptr.vmem [resolvable:$true] %s18_s23 }
   0x2   :  { %s1987_s24 = scalar_lea.vmem %s19_s23, 16  ;;  %p1992_p1 = scmp.lt.s32.totalorder %s19_s23, %s19_s23 }
   0x3   :  { %p1988_p0 = scmp.ne.s32.totalorder %s19_s23, %s1987_s24  ;;  %p1993_p2 = scmp.lt.s32.totalorder %s1987_s24, %s1987_s24 }
   0x5   :  { %p1994_p3 = por %p1993_p2, %p1992_p1 }
   0x7   :  { %p1995_p4 = pnand %p1994_p3, %p1988_p0 }
   0x9   :  { %1998 = shalt.err (!%p1995_p4)  }
   0xa   :  { %s2065_s25 = smov [#allocation3]  }
   0xb   :  { %21 = dma.vmem_to_smem %s19_s23, 16, %s2065_s25, [#allocation2] }
   0xc   :  { %2043 = dma.done.wait [#allocation2], 16 }
   0xd   :  { %2044 = vsyncadd [#allocation2], 4294967280 }
   0xe   :  { %23 = sfence }
   0xf   :  { %24 = vsyncpa [#allocation5], 0 }
  0x10   :  { %26 = vsyncpa [#allocation5 + $0x1], 0  ;;  %s2143_s26 = smov 0   ;;  %s2145_s27 = smov 0  }
  0x11   :  { %s2147_s0 = smov 0   ;;  %s2149_s28 = smov 0  }
  0x12 LB: > { %2508 = sst [smem:[#allocation8_spill]] %s2051_s26  ;;  %s2164_s29 = sadd.s32 4294967295, %s2063_s28   ;;  %s2063_s28 = sphi %s2149_s28, %s2518_s28   ;;  %s2059_s0 = sphi %s2147_s0, %s2520_s0   ;;  %s2055_s27 = sphi %s2145_s27, %s2522_s27   ;;  %s2051_s26 = sphi %s2143_s26, %s2521_s26  }
  0x13   : > { %2509 = sst [smem:[#allocation9_spill]] %s2059_s0  ;;  %s1750_s30 = sadd.s32 4294967294, %s2063_s28  }
  0x14   : > { %s2168_s13 = sadd.s32 1, %s2063_s28   ;;  %s325_s14 = sadd.s32 1, %s2059_s0 }
  0x15   : > { %2510 = sst [smem:[#allocation10_spill]] %s2168_s13  ;;  %s322_s15 = ssub.s32 %s2063_s28, %s2168_s13 }
  0x16   : > { %p335_p5 = scmp.ne.s32.totalorder %s2059_s0, %s2055_s27  ;;  %p323_p6 = scmp.eq.s32.totalorder %s322_s15, 0 }
  0x17   : > { %p336_p7 = scmp.eq.s32.totalorder %s2164_s29, 1  ;;  %p341_p8 = scmp.ne.s32.totalorder %s2055_s27, %s2051_s26 }
  0x18   : > { %p342_p9 = scmp.eq.s32.totalorder %s1750_s30, 1  ;;  %p1753_p12 = scmp.ge.s32.totalorder %s2063_s28, 1 }
  0x19   : > { %s2179_s16 = scalar_select %p323_p6, %s2059_s0, %s325_s14  }
  0x1a   : > { %p2181_p10 = por %p336_p7, %p335_p5  ;;  %p2185_p11 = por %p342_p9, %p341_p8 }
  0x1b   : > { %2511 = sst [smem:[#allocation11_spill]] %s2179_s16  ;;  %p445_p13 = scmp.lt.s32.totalorder %s2063_s28, 3 }
  0x1c   : > { %s2513_s18 = scalar_select %p2185_p11, 1, 0 }
  0x1d   : > { %p446_p0 = pnand %p1753_p12, %p445_p13 }
  0x1e   : > { %2514 = sst [smem:[#allocation12_spill]] %s2513_s18  ;;  %s2192_s19 = sshll.u32 (!%p446_p0), %s2164_s29, 1  ;;  %vm637_vm0 = vcmask (!%p446_p0), 64512   ;;  %vm776_vm1 = vcmask (!%p446_p0), 130048   ;;  %v2066_v33 = vmov (!%p446_p0), 0   ;;  %v2067_v35 = vmov (!%p446_p0), 1  }
  0x1f   : > { %449 = sbr.rel (%p446_p0) target bundleno = 1456 (0x5b0), region = 56  ;;  %p542_p1 = scmp.lt.s32.totalorder (!%p446_p0), %s2192_s19, 3  ;;  %1960 = vset.pattern.permute.xlu0 (!%p446_p0), %v2066_v33  ;;  %1961 = vset.pattern.permute.xlu1 (!%p446_p0), %v2067_v35  ;;  %v2068_v37 = vmov (!%p446_p0), 2   ;;  %v2069_v42 = vmov (!%p446_p0), 0.0|0.0   ;;  %vm2070_vm2 = vmmov (!%p446_p0), 0   ;;  %v2071_v43 = vmov (!%p446_p0), 0.0  }
  0x20   : > { %s2195_s20 = smul.u32 (!%p446_p0), 10, %s2164_s29  ;;  %s2515_s1 = sld [smem:[#allocation13_spill]] (!%p446_p0) }
  0x21   : > { %s1055_s15 = sadd.s32 (!%p446_p0), 1, %s2192_s19 }
  0x22   : > { %s617_s21 = sadd.s32 (!%p446_p0), 1, %s2195_s20  ;;  %s619_s22 = sadd.s32 (!%p446_p0), 2, %s2195_s20 }
  0x23   : > { %s618_s24 = sld [smem:[#allocation3 + %s617_s21]] (!%p446_p0)  ;;  %s2290_s26 = smul.u32 (!%p446_p0), 5, %s1055_s15 }
  0x24   : > { %s2201_s25 = sld [smem:[#allocation3 + %s619_s22]] (!%p446_p0)  ;;  %s623_s22 = sadd.s32 (!%p446_p0), 4, %s2195_s20 }
  0x25   : > { %s2292_s13 = sld [smem:[#allocation3 + %s623_s22]] (!%p446_p0)  ;;  %s1060_s18 = sadd.s32 (!%p446_p0), 2, %s2290_s26 }
  0x26   : > { %s543_s23 = scalar_select %p542_p1, %s2192_s19, 3 }
  0x27   : > { %s1058_s19 = sadd.s32 1, %s2290_s26  ;;  %s2297_s15 = sld [smem:[#allocation3 + %s1060_s18]] }
  0x28   : > { %s2203_s30 = sshll.u32 %s543_s23, 3  ;;  %s2205_s14 = sshll.u32 %s543_s23, 4 }
  0x29   : > { %s2211_s0 = scalar_lea.vmem %s2497_s8, %s2203_s30  ;;  %s2217_s21 = scalar_lea.vmem %s2515_s1, %s2205_s14  ;;  %v2232_v6 = vstv %s618_s24 }
  0x2a   : > { %v636_v0 = vld [vmem:[%s2211_s0] sm:$0xff]  ;;  %s2224_s23 = scalar_lea.vmem %s2491_s2, %s2205_s14  ;;  %v677_v5 = vstv %s2201_s25  ;;  %v2243_v26 = vld [vmem:[%s2217_s21 + $0x8] sm:$0xff]  ;;  %s2255_s16 = scalar_lea.vmem %s2493_s4, %s2205_s14 }
  0x2b   : > { %v638_v1 = vsel %vm637_vm0, %v636_v0, -inf  ;;  %v627_v2 = vld [vmem:[%s2224_s23] sm:$0xff]  ;;  %v628_v25 = vld [vmem:[%s2224_s23 + $0x8] sm:$0xff]  ;;  %v682_v28 = vmul.f32 %v2232_v6, %v2243_v26  ;;  %s2263_s25 = scalar_lea.vmem %s2495_s6, %s2205_s14  ;;  %s1059_s24 = sld [smem:[#allocation3 + %s1058_s19]] }
  0x2c   : > { %v639_v3 = vrot.slane %v638_v1, 4  ;;  %v2229_v4 = vld [vmem:[%s2217_s21] sm:$0xff]  ;;  %v2234_v8 = vmul.f32 %v677_v5, %v627_v2  ;;  %v2245_v27 = vmul.f32 %v677_v5, %v628_v25  ;;  %v634_v36 = vld [vmem:[%s2263_s25 + $0x8] sm:$0xff]  ;;  %s2304_s1 = scalar_lea.vmem %s2499_s10, %s2205_s14  ;;  %s2381_s18 = scalar_lea.vmem %s2496_s7, %s2203_s30 }
  0x2d   : > { %v681_v9 = vmul.f32 %v2232_v6, %v2229_v4  ;;  %v630_v32 = vld [vmem:[%s2255_s16] sm:$0xff]  ;;  %v631_v41 = vld [vmem:[%s2255_s16 + $0x8] sm:$0xff] }
  0x2e   : > { %v640_v7 = vmax.f32 %v638_v1, %v639_v3  ;;  %v684_v31 = vadd.f32 %v682_v28, %v2245_v27  ;;  %1859 = vmatprep.mubr.msk.f32.mxu1 %vm776_vm1, %v630_v32  ;;  %v633_v34 = vld [vmem:[%s2263_s25] sm:$0xff]  ;;  %v1801_v44 = vld [vmem:[%s2211_s0 + $0x8] sm:$0xff]  ;;  %s616_s0 = sld [smem:[#allocation3 + %s2195_s20]]  ;;  %v2323_v28 = vld [vmem:[%s2217_s21 + $0x10] sm:$0xff] }
  0x2f   : > { %v683_v11 = vadd.f32 %v681_v9, %v2234_v8  ;;  %768 = vperm.xlu0 %1960, %v633_v34   ;;  %864 = vperm.xlu1 %1961, %v633_v34   ;;  %v1086_v45 = vsel %vm637_vm0, %v1801_v44, -inf }
  0x30   : > { %v641_v10 = vrot.slane %v640_v7, 2  ;;  %v1087_v46 = vrot.slane %v1086_v45, 4 }
  0x31   : > { %1852 = vmatprep.mubr.msk.f32.mxu0 %vm637_vm0, %v683_v11 }
  0x32   : > { %v642_v12 = vmax.f32 %v640_v7, %v641_v10  ;;  %v1088_v47 = vmax.f32 %v1086_v45, %v1087_v46 }
  0x33   : > { %773 = vperm.xlu0 %1960, %v634_v36   ;;  %868 = vperm.xlu1 %1961, %v634_v36  }
  0x34   : > { %v643_v13 = vrot.slane %v642_v12, 1  ;;  %v1089_v48 = vrot.slane %v1088_v47, 2  ;;  %v858_v1 = vstv %s616_s0  ;;  %s2315_s0 = scalar_lea.vmem %s2500_s11, %s2205_s14 }
  0x36   : > { %v644_v14 = vmax.f32 %v642_v12, %v643_v13  ;;  %v1090_v49 = vmax.f32 %v1088_v47, %v1089_v48 }
  0x37   : > { %1963 = vset.pattern.permute.xlu1 %v2068_v37  ;;  %1962 = vset.pattern.permute.xlu0 %v2068_v37 }
  0x38   : > { %v645_v15 = vsub.f32 %v636_v0, %v644_v14  ;;  %878 = vperm.xlu1 %1963, %v634_v36   ;;  %874 = vperm.xlu0 %1962, %v633_v34   ;;  %v1091_v50 = vrot.slane %v1090_v49, 1 }
  0x3a   : > { %v646_v16 = vmul.f32 1.442695, %v645_v15  ;;  %v1092_v51 = vmax.f32 %v1090_v49, %v1091_v50 }
  0x3c   : > { %1971 = vpow2.f32 %v646_v16  ;;  %1964 = vset.pattern.permute.xlu1 %v2066_v33  ;;  %1965 = vset.pattern.permute.xlu0 %v2066_v33  ;;  %v1093_v52 = vsub.f32 %v1801_v44, %v1092_v51 }
  0x3e   : > { %v1094_v53 = vmul.f32 1.442695, %v1093_v52 }
  0x46   : > { %v1972_v17 = vpop.eup %1971 }
  0x47   : > { %v648_v18 = vsel %vm637_vm0, %v1972_v17, 0.0 }
  0x48   : > { %v649_v19 = vrot.slane %v648_v18, 4 }
  0x4a   : > { %v650_v20 = vadd.f32 %v649_v19, %v648_v18  ;;  %v889_v19 = vstv %s2292_s13 }
  0x4c   : > { %v651_v21 = vrot.slane %v650_v20, 2 }
  0x4e   : > { %v652_v22 = vadd.f32 %v651_v21, %v650_v20 }
  0x50   : > { %v653_v23 = vrot.slane %v652_v22, 1 }
  0x52   : > { %v654_v24 = vadd.f32 %v653_v23, %v652_v22 }
  0x54   : > { %1973 = vrcp.f32 %v654_v24 }
  0x55   : > { %1975 = vpow2.f32 %v1094_v53 }
  0x5e   : > { %v1974_v29 = vpop.eup %1973 }
  0x5f   : > { %v656_v30 = vmul.f32 %v1974_v29, %v1972_v17  ;;  %v2283_v54 = vpop.eup %1975  ;;  %v1792_v29 = vld [vmem:[%s2224_s23 + $0x10] sm:$0xff] }
  0x60   : > { %v1096_v55 = vsel %vm637_vm0, %v2283_v54, 0.0 }
  0x61   : > { %1850 = vmatprep.subr.mxu0 %v656_v30  ;;  %v1097_v56 = vrot.slane %v1096_v55, 4 }
  0x62   : > { %1851 = vmatpush3.msra.mxu0 %v656_v30  ;;  %v1126_v30 = vstv %s2297_s15  ;;  %s2366_s15 = scalar_lea.vmem %s2498_s9, %s2203_s30 }
  0x63   : > { %1853 = vmatmul.mubr.msk.f32.vlgmr.msra.gmra.mrb[0].mxu0 %vm637_vm0, %v684_v31  ;;  %1902 = vmatprep.subr.bf16.mxu0 %v2069_v42  ;;  %v1098_v57 = vadd.f32 %v1097_v56, %v1096_v55  ;;  %v2327_v31 = vstv %s1059_s24  ;;  %s2346_s24 = scalar_lea.vmem %s2494_s5, %s2203_s30  ;;  %v657_v49 = vld [vmem:[%s2366_s15] sm:$0xff] }
  0x64   : > { %1866 = vmatprep.mubr.msk.f32.mxu0 %vm2070_vm2, %v2071_v43  ;;  %v632_v46 = vld [vmem:[%s2346_s24] sm:$0xff]  ;;  %v658_v50 = vsel %vm637_vm0, %v657_v49, -inf }
  0x65   : > { %v1099_v58 = vrot.slane %v1098_v57, 2  ;;  %v659_v51 = vrot.slane %v658_v50, 4 }
  0x67   : > { %v1100_v59 = vadd.f32 %v1099_v58, %v1098_v57  ;;  %v660_v52 = vmax.f32 %v658_v50, %v659_v51 }
  0x69   : > { %v1101_v62 = vrot.slane %v1100_v59, 1  ;;  %v661_v53 = vrot.slane %v660_v52, 2 }
  0x6b   : > { %v1102_v2 = vadd.f32 %v1101_v62, %v1100_v59 }
  0x6d   : > { %1977 = vrcp.f32 %v1102_v2 }
  0x77   : > { %v1978_v32 = vpop.eup %1977 }
  0xae   : > { %v769_v60 = vpop.permute.xlu0 %768  ;;  %v865_v61 = vpop.permute.xlu1 %864 }
  0xb2   : > { %v774_v63 = vpop.permute.xlu0 %773  ;;  %v869_v7 = vpop.permute.xlu1 %868 }
  0xb7   : > { %v879_v13 = vpop.permute.xlu1 %878  ;;  %v875_v16 = vpop.permute.xlu0 %874 }
 0x136   : > { %v1854_v38 = vpop.f32.mrb[0].mxu0 }
 0x137   : > { %v757_v39 = vpop.f32.mrb[1].mxu0 }
 0x138   : > { %v1898_v40 = vpack.c.bf16 %v1854_v38, %v757_v39  ;;  %v2338_v39 = vmul.f32 %v1792_v29, %v1126_v30 }
 0x13a   : > { %1899 = vmatprep.subr.bf16.mxu1 %v1898_v40 }
 0x13b   : > { %1901 = vmatpush3.bf16.msra.mxu1 %v1898_v40  ;;  %v1130_v40 = vmul.f32 %v2323_v28, %v2327_v31 }
 0x13c   : > { %1869 = vmatprep.subr.mxu1 %v2071_v43 }
 0x13d   : > { %v1132_v47 = vadd.f32 %v1130_v40, %v2338_v39 }
 0x13e   : > { %1860 = vmatmul.mubr.msk.f32.vlgmr.msra.gmra.mrb[0].mxu1 %vm776_vm1, %v631_v41 }
 0x13f   : > { %1871 = vmatprep.mubr.msk.f32.mxu1 %vm2070_vm2, %v2071_v43 }
 0x211   : > { %v1861_v0 = vpop.f32.mrb[0].mxu1 }
 0x212   : > { %v855_v3 = vadd.f32 %v1861_v0, %v774_v63  ;;  %v849_v5 = vpop.f32.mrb[1].mxu1 }
 0x213   : > { %v850_v9 = vadd.f32 %v849_v5, %v769_v60  ;;  %v1798_v5 = vld [vmem:[%s2263_s25 + $0x10] sm:$0xff] }
 0x214   : > { %v860_v10 = vmul.f32 %v858_v1, %v855_v3  ;;  %1217 = vperm.xlu1 %1964, %v1798_v5  }
 0x215   : > { %v859_v11 = vmul.f32 %v858_v1, %v850_v9  ;;  %v635_v9 = vld [vmem:[%s2381_s18] sm:$0xff] }
 0x216   : > { %v862_v12 = vsub.f32 %v2243_v26, %v860_v10 }
 0x217   : > { %v861_v14 = vsub.f32 %v2229_v4, %v859_v11 }
 0x218   : > { %v872_v15 = vmax.f32 %v862_v12, %v869_v7  ;;  %v1799_v7 = vld [vmem:[%s2263_s25 + $0x18] sm:$0xff]  ;;  %1966 = vset.pattern.permute.xlu1 %v2067_v35  ;;  %v1795_v35 = vld [vmem:[%s2255_s16 + $0x10] sm:$0xff] }
 0x219   : > { %v871_v17 = vmax.f32 %v861_v14, %v865_v61  ;;  %1222 = vperm.xlu0 %1965, %v1799_v7   ;;  %1312 = vperm.xlu1 %1966, %v1798_v5   ;;  %v1796_v14 = vld [vmem:[%s2255_s16 + $0x18] sm:$0xff]  ;;  %s621_s16 = sadd.s32 3, %s2195_s20  ;;  %s1057_s20 = sld [smem:[#allocation3 + %s2290_s26]] }
 0x21a   : > { %v882_v18 = vmin.f32 %v872_v15, %v879_v13  ;;  %s622_s25 = sld [smem:[#allocation3 + %s621_s16]] }
 0x21b   : > { %v881_v20 = vmin.f32 %v871_v17, %v875_v16 }
 0x21c   : > { %v884_v21 = vmul.f32 %v882_v18, %v2232_v6  ;;  %v888_v22 = vsub.f32 %v882_v18, %v2243_v26  ;;  %1051 = vst.msk [vmem:[%s2304_s1 + $0x8] sm:$0xff] %vm637_vm0, %v882_v18 }
 0x21d   : > { %v883_v23 = vmul.f32 %v881_v20, %v2232_v6  ;;  %v887_v24 = vsub.f32 %v881_v20, %v2229_v4  ;;  %1050 = vst.msk [vmem:[%s2304_s1] sm:$0xff] %vm637_vm0, %v881_v20  ;;  %v2333_v4 = vld [vmem:[%s2217_s21 + $0x18] sm:$0xff]  ;;  %1967 = vset.pattern.permute.xlu0 %v2068_v37  ;;  %1316 = vperm.xlu1 %1966, %v1799_v7   ;;  %s2401_s21 = scalar_lea.vmem %s2492_s3, %s2203_s30  ;;  %s1064_s30 = sadd.s32 4, %s2290_s26 }
 0x21e   : > { %v886_v25 = vadd.f32 %v884_v21, %v2245_v27  ;;  %v891_v26 = vmul.f32 %v889_v19, %v888_v22  ;;  %v1793_v27 = vld [vmem:[%s2224_s23 + $0x18] sm:$0xff]  ;;  %v1131_v45 = vmul.f32 %v2333_v4, %v2327_v31  ;;  %1322 = vperm.xlu0 %1967, %v1798_v5   ;;  %s538_s23 = sand.u32 1, %s2055_s27   ;;  %s1065_s19 = sld [smem:[#allocation3 + %s1064_s30]] }
 0x21f   : > { %v885_v34 = vadd.f32 %v883_v23, %v2234_v8  ;;  %v890_v6 = vmul.f32 %v889_v19, %v887_v24  ;;  %v1104_v8 = vmul.f32 %v1978_v32, %v2283_v54  ;;  %v2349_v44 = vmul.f32 %v1793_v27, %v1126_v30 }
 0x220   : > { %v893_v36 = vadd.f32 %v891_v26, %v882_v18  ;;  %1053 = vst.msk [vmem:[%s2315_s0 + $0x8] sm:$0xff] %vm637_vm0, %v886_v25  ;;  %v662_v54 = vmax.f32 %v660_v52, %v661_v53 }
 0x221   : > { %v892_v38 = vadd.f32 %v890_v6, %v881_v20  ;;  %1052 = vst.msk [vmem:[%s2315_s0] sm:$0xff] %vm637_vm0, %v885_v34  ;;  %v1133_v48 = vadd.f32 %v1131_v45, %v2349_v44  ;;  %1968 = vset.pattern.permute.xlu1 %v2068_v37 }
 0x222   : > { %v663_v55 = vrot.slane %v662_v54, 1  ;;  %1970 = vset.pattern.permute.xlu0 %v2066_v33  ;;  %1326 = vperm.xlu1 %1968, %v1799_v7  }
 0x223   : > { %v1903_v41 = vpack.c.bf16 %v893_v36, %v892_v38 }
 0x225   : > { %1904 = vmatpush3.bf16.msra.mxu0 %v1903_v41 }
 0x226   : > { %1874 = vmatprep.subr.mxu0 %v1104_v8  ;;  %1969 = vset.pattern.permute.xlu1 %v2066_v33  ;;  %v1802_v33 = vld [vmem:[%s2366_s15 + $0x8] sm:$0xff]  ;;  %s1754_s15 = sshll.u32 %s538_s23, 4 }
 0x227   : > { %1042 = vperm.xlu1 %1969, %v635_v9   ;;  %v1107_v15 = vsel %vm637_vm0, %v1802_v33, -inf  ;;  %s2408_s22 = scalar_lea.vmem [#allocation4], %s1754_s15 }
 0x228   : > { %1867 = vmatmul.mubr.msk.f32.vlgmr.msra.gmra.mrb[2].mxu0 %vm776_vm1, %v632_v46  ;;  %v1108_v16 = vrot.slane %v1107_v15, 4  ;;  %v1046_v46 = vstv %s622_s25 }
 0x229   : > { %1875 = vmatpush3.msra.mxu0 %v1104_v8  ;;  %1876 = vmatprep.mubr.msk.f32.mxu0 %vm637_vm0, %v1132_v47 }
 0x22a   : > { %1909 = vmatprep.subr.bf16.mxu0 %v2069_v42  ;;  %v664_v42 = vmax.f32 %v662_v54, %v663_v55  ;;  %v1109_v17 = vmax.f32 %v1107_v15, %v1108_v16  ;;  %v1306_v55 = vstv %s1057_s20 }
 0x22c   : > { %1877 = vmatmul.mubr.msk.f32.vlgmr.msra.gmra.mrb[4].mxu0 %vm637_vm0, %v1133_v48  ;;  %v665_v56 = vsub.f32 %v657_v49, %v664_v42  ;;  %v1110_v18 = vrot.slane %v1109_v17, 2  ;;  %v629_v49 = vld [vmem:[%s2401_s21] sm:$0xff] }
 0x22d   : > { %1890 = vmatprep.mubr.msk.f32.mxu0 %vm2070_vm2, %v2071_v43 }
 0x22e   : > { %v666_v57 = vmul.f32 1.442695, %v665_v56  ;;  %v1111_v19 = vmax.f32 %v1109_v17, %v1110_v18 }
 0x230   : > { %1979 = vpow2.f32 %v666_v57  ;;  %v1112_v20 = vrot.slane %v1111_v19, 1 }
 0x232   : > { %v1113_v21 = vmax.f32 %v1111_v19, %v1112_v20  ;;  %v1794_v19 = vld [vmem:[%s2401_s21 + $0x8] sm:$0xff] }
 0x234   : > { %v1114_v22 = vsub.f32 %v1802_v33, %v1113_v21 }
 0x236   : > { %v1115_v23 = vmul.f32 1.442695, %v1114_v22 }
 0x23a   : > { %v1980_v58 = vpop.eup %1979 }
 0x23b   : > { %v668_v59 = vsel %vm637_vm0, %v1980_v58, 0.0 }
 0x23c   : > { %v669_v60 = vrot.slane %v668_v59, 4 }
 0x23e   : > { %v670_v61 = vadd.f32 %v669_v60, %v668_v59 }
 0x240   : > { %v671_v62 = vrot.slane %v670_v61, 2 }
 0x242   : > { %v672_v63 = vadd.f32 %v671_v62, %v670_v61 }
 0x244   : > { %v673_v0 = vrot.slane %v672_v63, 1 }
 0x246   : > { %v674_v1 = vadd.f32 %v673_v0, %v672_v63 }
 0x248   : > { %1981 = vrcp.f32 %v674_v1 }
 0x249   : > { %1983 = vpow2.f32 %v1115_v23 }
 0x252   : > { %v1982_v2 = vpop.eup %1981 }
 0x253   : > { %v676_v3 = vmul.f32 %v1982_v2, %v1980_v58  ;;  %v1984_v24 = vpop.eup %1983  ;;  %v1337_v2 = vstv %s1065_s19 }
 0x254   : > { %v1117_v25 = vsel %vm637_vm0, %v1984_v24, 0.0 }
 0x255   : > { %1870 = vmatpush3.msra.mxu1 %v676_v3  ;;  %v1118_v26 = vrot.slane %v1117_v25, 4 }
 0x257   : > { %v1119_v29 = vadd.f32 %v1118_v26, %v1117_v25 }
 0x293   : > { %v1218_v38 = vpop.permute.xlu1 %1217 }
 0x298   : > { %v1313_v27 = vpop.permute.xlu1 %1312  ;;  %v1223_v53 = vpop.permute.xlu0 %1222 }
 0x29c   : > { %v1317_v40 = vpop.permute.xlu1 %1316 }
 0x29d   : > { %v1323_v63 = vpop.permute.xlu0 %1322 }
 0x2a1   : > { %v1327_v8 = vpop.permute.xlu1 %1326 }
 0x2a6   : > { %v1043_v41 = vpop.permute.xlu1 %1042 }
 0x2fb   : > { %v963_v10 = vpop.f32.mrb[2].mxu0 }
 0x2fc   : > { %v1868_v11 = vpop.f32.mrb[3].mxu0  ;;  %1872 = vmatmul.mubr.msk.f32.vlgmr.msra.gmra.mrb[2].mxu1 %vm637_vm0, %v963_v10 }
 0x2fd   : > { %1883 = vmatprep.mubr.msk.f32.mxu1 %vm776_vm1, %v1795_v35 }
 0x2ff   : > { %v1878_v37 = vpop.f32.mrb[4].mxu0 }
 0x300   : > { %v1206_v12 = vpop.f32.mrb[5].mxu0 }
 0x301   : > { %v1905_v13 = vpack.c.bf16 %v1878_v37, %v1206_v12 }
 0x303   : > { %1906 = vmatprep.subr.bf16.mxu1 %v1905_v13 }
 0x304   : > { %1908 = vmatpush3.bf16.msra.mxu1 %v1905_v13 }
 0x305   : > { %1893 = vmatprep.subr.mxu1 %v2071_v43 }
 0x307   : > { %1884 = vmatmul.mubr.msk.f32.vlgmr.msra.gmra.mrb[4].mxu1 %vm776_vm1, %v1796_v14 }
 0x308   : > { %1895 = vmatprep.mubr.msk.f32.mxu1 %vm2070_vm2, %v2071_v43  ;;  %v1120_v43 = vrot.slane %v1119_v29, 2 }
 0x30a   : > { %v1121_v30 = vadd.f32 %v1120_v43, %v1119_v29 }
 0x30c   : > { %v1122_v32 = vrot.slane %v1121_v30, 1 }
 0x30e   : > { %v1123_v34 = vadd.f32 %v1122_v32, %v1121_v30 }
 0x310   : > { %1985 = vrcp.f32 %v1123_v34 }
 0x31a   : > { %v1986_v6 = vpop.eup %1985 }
 0x31b   : > { %v1125_v36 = vmul.f32 %v1986_v6, %v1984_v24 }
 0x31d   : > { %1894 = vmatpush3.msra.mxu1 %v1125_v36 }
 0x3cf   : > { %v1036_v45 = vpop.f32.mrb[2].mxu1 }
 0x3d0   : > { %v1045_v47 = vsub.f32 %v1043_v41, %v1036_v45  ;;  %v1873_v48 = vpop.f32.mrb[3].mxu1 }
 0x3d2   : > { %v1047_v50 = vmul.f32 %v1046_v46, %v1045_v47 }
 0x3d4   : > { %v1048_v51 = vadd.f32 %v1047_v50, %v629_v49 }
 0x3d6   : > { %v1049_v52 = vmax.f32 %v1048_v51, 0.0 }
 0x3d8   : > { %1054 = vst.msk [vmem:[%s2408_s22] sm:$0xff] %vm637_vm0, %v1049_v52 }
 0x3da   : > { %v1885_v54 = vpop.f32.mrb[4].mxu1 }
 0x3db   : > { %v1303_v42 = vadd.f32 %v1885_v54, %v1223_v53  ;;  %v1297_v56 = vpop.f32.mrb[5].mxu1 }
 0x3dc   : > { %v1298_v57 = vadd.f32 %v1297_v56, %v1218_v38 }
 0x3dd   : > { %v1308_v58 = vmul.f32 %v1306_v55, %v1303_v42 }
 0x3de   : > { %v1307_v59 = vmul.f32 %v1306_v55, %v1298_v57 }
 0x3df   : > { %v1310_v60 = vsub.f32 %v2333_v4, %v1308_v58 }
 0x3e0   : > { %v1309_v61 = vsub.f32 %v2323_v28, %v1307_v59 }
 0x3e1   : > { %v1320_v62 = vmax.f32 %v1310_v60, %v1317_v40 }
 0x3e2   : > { %v1319_v0 = vmax.f32 %v1309_v61, %v1313_v27 }
 0x3e3   : > { %v1330_v1 = vmin.f32 %v1320_v62, %v1327_v8 }
 0x3e4   : > { %v1329_v3 = vmin.f32 %v1319_v0, %v1323_v63 }
 0x3e5   : > { %v1332_v5 = vmul.f32 %v1330_v1, %v2327_v31  ;;  %1810 = vst.msk [vmem:[%s2304_s1 + $0x18] sm:$0xff] %vm637_vm0, %v1330_v1  ;;  %v1336_v7 = vsub.f32 %v1330_v1, %v2333_v4 }
 0x3e6   : > { %v1331_v9 = vmul.f32 %v1329_v3, %v2327_v31  ;;  %v1335_v35 = vsub.f32 %v1329_v3, %v2323_v28  ;;  %1809 = vst.msk [vmem:[%s2304_s1 + $0x10] sm:$0xff] %vm637_vm0, %v1329_v3  ;;  %v1797_v31 = vld [vmem:[%s2346_s24 + $0x8] sm:$0xff]  ;;  %s1062_s1 = sadd.s32 3, %s2290_s26  ;;  %s1540_s24 = sshll.u32 %s2408_s22, 4  ;;  %s2442_s24 = int_to_ptr.vmem [resolvable:$true] %s1540_s24 }
 0x3e7   : > { %v1334_v10 = vadd.f32 %v1332_v5, %v2349_v44  ;;  %v1339_v11 = vmul.f32 %v1337_v2, %v1336_v7  ;;  %v1800_v28 = vld [vmem:[%s2381_s18 + $0x8] sm:$0xff]  ;;  %s1063_s16 = sld [smem:[#allocation3 + %s1062_s1]]  ;;  %s2448_s26 = scalar_lea.sflag [#allocation5], %s538_s23 }
 0x3e8   : > { %v1333_v37 = vadd.f32 %v1331_v9, %v2338_v39  ;;  %v1338_v12 = vmul.f32 %v1337_v2, %v1335_v35  ;;  %1490 = vperm.xlu0 %1970, %v1800_v28   ;;  %s1999_s13 = scalar_lea.vmem %s2442_s24, 256 }
 0x3e9   : > { %1812 = vst.msk [vmem:[%s2315_s0 + $0x18] sm:$0xff] %vm637_vm0, %v1334_v10  ;;  %v1341_v13 = vadd.f32 %v1339_v11, %v1330_v1  ;;  %p2000_p2 = scmp.ne.s32.totalorder %s2442_s24, %s1999_s13 }
 0x3ea   : > { %v1340_v14 = vadd.f32 %v1338_v12, %v1329_v3  ;;  %1811 = vst.msk [vmem:[%s2315_s0 + $0x10] sm:$0xff] %vm637_vm0, %v1333_v37  ;;  %s1825_s0 = sshll.u32 %s2164_s29, 8  ;;  %s2072_s29 = smov [#allocation4]  }
 0x3eb   : > { %s2440_s14 = scalar_lea.hbm %s2501_s12, %s1825_s0  ;;  %p2001_p3 = pnand %p2000_p2, %p2181_p10 }
 0x3ec   : > { %v1910_v4 = vpack.c.bf16 %v1341_v13, %v1340_v14  ;;  %s2003_s21 = sshll.u32 %s2072_s29, 4  ;;  %s2004_s21 = int_to_ptr.vmem [resolvable:$false] %s2003_s21 }
 0x3ed   : > { %v1494_v16 = vstv %s1063_s16  ;;  %p2002_p4 = pneg %p2001_p3  ;;  %s2005_s15 = scalar_lea.vmem %s2004_s21, 512 }
 0x3ee   : > { %1911 = vmatpush3.bf16.msra.mxu0 %v1910_v4  ;;  %p2006_p5 = scmp.lt.s32.totalorder %s2442_s24, %s2004_s21  ;;  %p2007_p6 = scmp.lt.s32.totalorder %s2005_s15, %s1999_s13 }
 0x3f0   : > { %p2008_p7 = por %p2007_p6, %p2006_p5 }
 0x3f1   : > { %1891 = vmatmul.mubr.msk.f32.vlgmr.msra.gmra.mrb[6].mxu0 %vm776_vm1, %v1797_v31 }
 0x3f2   : > { %p2009_p8 = pnand %p2008_p7, %p2002_p4 }
 0x467   : > { %v1491_v39 = vpop.permute.xlu0 %1490 }
 0x4c4   : > { %v1411_v44 = vpop.f32.mrb[6].mxu0 }
 0x4c5   : > { %v1892_v33 = vpop.f32.mrb[7].mxu0  ;;  %1896 = vmatmul.mubr.msk.f32.vlgmr.msra.gmra.mrb[6].mxu1 %vm637_vm0, %v1411_v44 }
 0x598   : > { %v1484_v15 = vpop.f32.mrb[6].mxu1 }
 0x599   : > { %v1493_v17 = vsub.f32 %v1491_v39, %v1484_v15  ;;  %v1897_v18 = vpop.f32.mrb[7].mxu1 }
 0x59b   : > { %v1495_v20 = vmul.f32 %v1494_v16, %v1493_v17 }
 0x59d   : > { %v1496_v21 = vadd.f32 %v1794_v19, %v1495_v20 }
 0x59f   : > { %v1497_v22 = vmax.f32 %v1496_v21, 0.0 }
 0x5a1   : > { %1813 = vst.msk [vmem:[%s2408_s22 + $0x8] sm:$0xff] %vm637_vm0, %v1497_v22 }
 0x5a2   : > { %2012 = shalt.err (!%p2009_p8)
}
 0x5a3   : > { %s2013_s23 = scalar_lea.hbm %s2440_s14, 256  ;;  %s2017_s30 = scalar_lea.hbm %s2501_s12, 512 }
 0x5a4   : > { %p2014_p9 = scmp.ne.s32.totalorder %s2440_s14, %s2013_s23  ;;  %p2018_p0 = scmp.lt.u32.totalorder %s2440_s14, %s2501_s12 }
 0x5a5   : > { %p2019_p1 = scmp.lt.u32.totalorder %s2017_s30, %s2013_s23  ;;  %p2021_p3 = scmp.lt.u32.totalorder %s2013_s23, %s2440_s14 }
 0x5a6   : > { %p2015_p12 = pnand %p2014_p9, %p2181_p10 }
 0x5a7   : > { %p2020_p2 = por %p2019_p1, %p2018_p0 }
 0x5a8   : > { %p2016_p13 = pneg %p2015_p12 }
 0x5a9   : > { %p2022_p4 = por %p2021_p3, %p2020_p2 }
 0x5ab   : > { %p2023_p5 = pnand %p2022_p4, %p2016_p13 }
 0x5ad   : > { %2026 = shalt.err (!%p2023_p5)
}
 0x5ae   : > { %s2073_s16 = smov 128   ;;  %s2074_s0 = smov 8  }
 0x5af   : > { %1912 = dma.vmem_to_hbm [thread:$0]  (%p2181_p10), %s2442_s24, 256, %s2440_s14, %s2448_s26, %s2073_s16, %s2073_s16, %s2074_s0  }
 0x5b0 PF: > { %s2516_s18 = sld [smem:[#allocation8_spill]]  ;;  %p1918_p6 = scmp.ge.s32.totalorder %s2063_s28, 2 }
 0x5b2   : > { %p1915_p7 = pnand %p1918_p6, %p2185_p11 }
 0x5b6   : > { %s1573_s13 = sand.u32 1, %s2516_s18  }
 0x5b7   : > { %s1574_s29 = scalar_lea.sflag [#allocation5], %s1573_s13 }
 0x5b8   : > { %2046 = dma.done.wait (!%p1915_p7), %s1574_s29, 256  }
 0x5b9   : > { %2048 = vsyncadd (!%p1915_p7), %s1574_s29, 4294967040  ;;  %s2518_s28 = sld [smem:[#allocation10_spill]]  ;;  %s2519_s21 = sld [smem:[#allocation9_spill]] }
 0x5ba   : > { %s2520_s0 = sld [smem:[#allocation11_spill]]  ;;  %s2521_s26 = smov %s2055_s27 }
 0x5bf   : > { %p29_p8 = scmp.ge.s32.totalorder %s2518_s28, 4   ;;  %s2522_s27 = smov %s2519_s21 }
 0x5c1   :  { %31 = sbr.rel (!%p29_p8) target bundleno = 18 (0x12), region = 151 }
 0x5c8   :  { %1579 = vsyncpa [#allocation5], 1 }
 0x5c9   :  { %1581 = vsyncpa [#allocation5 + $0x1], 1 }

</bundles_post_ra>
